<compile_context>
chip_gen: v7x
topology: tpu7x:2x2x1
jax: 0.10.0
libtpu: 0.0.40
codegen_flags: <defaults>
</compile_context>

<pallas_src>
import functools

import jax
import jax.numpy as jnp
from jax.experimental import pallas as pl
from jax.experimental.pallas import tpu as pltpu


def _mlp_kernel(x_ref, w1t_ref, b1_ref, w2t_ref, b2_ref, w3_ref, b3_ref, o_ref):
    # x:   (TB, D) f32      w1t: (D, H1)    b1: (1, H1) f32
    # w2t: (H1, H2)          b2: (1, H2) f32
    # w3:  (1, H2) f32       b3: (1, 1) f32        o: (TB, 1) f32
    mxu_dtype = w1t_ref.dtype
    xb = x_ref[...].astype(mxu_dtype)                                # in-kernel cast (VPU)
    h1 = jnp.dot(xb, w1t_ref[...], preferred_element_type=jnp.float32)
    h1 = jnp.maximum(h1 + b1_ref[...], 0.0)                          # (TB, H1) f32
    h2 = jnp.dot(h1.astype(mxu_dtype), w2t_ref[...],
                 preferred_element_type=jnp.float32)
    h2 = jnp.maximum(h2 + b2_ref[...], 0.0)                          # (TB, H2) f32
    # Final head (out_features == 1): VPU multiply + XLU lane reduction,
    # no 1-lane MXU matmul.
    z = jnp.sum(h2 * w3_ref[...], axis=1, keepdims=True) + b3_ref[...]   # (TB, 1)
    o_ref[...] = jax.nn.sigmoid(z)


def binary_classifier_forward(x, params, *, tile_b=1024, use_bf16=True):
    """x: [B, input_size] float32; params in PyTorch nn.Linear layout.
    Returns [B, 1] float32 sigmoid probabilities."""
    w1, b1, w2, b2, w3, b3 = params
    B, D = x.shape
    H1 = w1.shape[0]          # 128
    H2 = w2.shape[0]          # 64

    # MXU/lane-friendly batch tile (multiple of 128), clamped for small batches;
    # pad B up to a multiple of the tile.
    tb = min(tile_b, pl.cdiv(B, 128) * 128)
    b_pad = pl.cdiv(B, tb) * tb
    if b_pad != B:
        x = jnp.pad(x, ((0, b_pad - B), (0, 0)))

    op_dtype = jnp.bfloat16 if use_bf16 else jnp.float32
    # Weights pre-transposed once (tiny); biases as broadcast rows; all resident.
    w1t = w1.T.astype(op_dtype)                         # (D, H1)
    w2t = w2.T.astype(op_dtype)                         # (H1, H2)
    b1k = b1.reshape(1, H1).astype(jnp.float32)
    b2k = b2.reshape(1, H2).astype(jnp.float32)
    w3k = w3.reshape(1, H2).astype(jnp.float32)         # head row (VPU operand)
    b3k = b3.reshape(1, 1).astype(jnp.float32)

    const = lambda shape: pl.BlockSpec(shape, lambda i: (0, 0))

    out = pl.pallas_call(
        _mlp_kernel,
        out_shape=jax.ShapeDtypeStruct((b_pad, 1), jnp.float32),
        grid=(b_pad // tb,),
        in_specs=[
            pl.BlockSpec((tb, D), lambda i: (i, 0)),    # x: streamed batch tiles (f32)
            const((D, H1)), const((1, H1)),             # W1^T, b1 (VMEM-resident)
            const((H1, H2)), const((1, H2)),            # W2^T, b2 (VMEM-resident)
            const((1, H2)), const((1, 1)),              # w3, b3 (VMEM-resident)
        ],
        out_specs=pl.BlockSpec((tb, 1), lambda i: (i, 0)),
        compiler_params=pltpu.CompilerParams(
            dimension_semantics=("parallel",),   # shard batch tiles across TCs (v7x)
            vmem_limit_bytes=32 * 1024 * 1024,
        ),
    )(x, w1t, b1k, w2t, b2k, w3k, b3k)

    return out[:B]


def init_params(key, input_size):
    """Deterministic init mimicking nn.Linear (uniform ±1/sqrt(fan_in)),
    in native PyTorch layout: W is [out_features, in_features]."""
    def linear(k, fan_in, fan_out):
        kw, kb = jax.random.split(k)
        bound = 1.0 / jnp.sqrt(jnp.float32(fan_in))
        w = jax.random.uniform(kw, (fan_out, fan_in), jnp.float32, -bound, bound)
        b = jax.random.uniform(kb, (fan_out,), jnp.float32, -bound, bound)
        return w, b

    k1, k2, k3 = jax.random.split(key, 3)
    w1, b1 = linear(k1, input_size, 128)
    w2, b2 = linear(k2, 128, 64)
    w3, b3 = linear(k3, 64, 1)
    return (w1, b1, w2, b2, w3, b3)


def _reference(x, params):
    w1, b1, w2, b2, w3, b3 = params
    h1 = jnp.maximum(x @ w1.T + b1, 0.0)
    h2 = jnp.maximum(h1 @ w2.T + b2, 0.0)
    return jax.nn.sigmoid(h2 @ w3.T + b3)


if __name__ == "__main__":
    key = jax.random.PRNGKey(0)
    k_x, k_p = jax.random.split(key)

    batch, input_size = 8, 32
    x = jax.random.normal(k_x, (batch, input_size), jnp.float32)
    params = init_params(k_p, input_size)

    fwd_bf16 = jax.jit(functools.partial(binary_classifier_forward, use_bf16=True))
    fwd_f32 = jax.jit(functools.partial(binary_classifier_forward, use_bf16=False))

    out = fwd_bf16(x, params)
    jax.block_until_ready(out)
    out_f32 = fwd_f32(x, params)
    jax.block_until_ready(out_f32)

    ref = _reference(x, params)
    assert out.shape == (batch, 1)
    assert jnp.allclose(out_f32, ref, atol=1e-5, rtol=1e-5), "f32 path mismatch"
    assert jnp.allclose(out, ref, atol=2e-2, rtol=1e-2), "bf16 path mismatch"

    print("KERNEL_OK")
</pallas_src>

<mosaic_0001>
module attributes {stable_mosaic.version = 11 : i64} {
  func.func @_mlp_kernel(%arg0: i32, %arg1: memref<128x32xf32, #tpu.memory_space<vmem>>, %arg2: memref<32x128xbf16, #tpu.memory_space<vmem>>, %arg3: memref<1x128xf32, #tpu.memory_space<vmem>>, %arg4: memref<128x64xbf16, #tpu.memory_space<vmem>>, %arg5: memref<1x64xf32, #tpu.memory_space<vmem>>, %arg6: memref<1x64xf32, #tpu.memory_space<vmem>>, %arg7: memref<1x1xf32, #tpu.memory_space<vmem>>, %arg8: memref<128x1xf32, #tpu.memory_space<vmem>>) attributes {dimension_semantics = [#tpu.dimension_semantics<parallel>], iteration_bounds = array<i64: 1>, scalar_prefetch = 0 : i64, scratch_operands = 0 : i64, tpu.core_type = #tpu.core_type<tc>, window_params = [{transform_indices = @transform_0, window_bounds = array<i64: 128, 32>}, {pipeline_mode = #tpu.pipeline_mode<synchronous>, transform_indices = @transform_1, window_bounds = array<i64: 32, 128>}, {pipeline_mode = #tpu.pipeline_mode<synchronous>, transform_indices = @transform_2, window_bounds = array<i64: 1, 128>}, {pipeline_mode = #tpu.pipeline_mode<synchronous>, transform_indices = @transform_3, window_bounds = array<i64: 128, 64>}, {pipeline_mode = #tpu.pipeline_mode<synchronous>, transform_indices = @transform_4, window_bounds = array<i64: 1, 64>}, {pipeline_mode = #tpu.pipeline_mode<synchronous>, transform_indices = @transform_5, window_bounds = array<i64: 1, 64>}, {pipeline_mode = #tpu.pipeline_mode<synchronous>, transform_indices = @transform_6, window_bounds = array<i64: 1, 1>}, {transform_indices = @transform_7, window_bounds = array<i64: 128, 1>}]} {
    %c0 = arith.constant 0 : index
    %c0_0 = arith.constant 0 : index
    %0 = vector.load %arg1[%c0, %c0_0] : memref<128x32xf32, #tpu.memory_space<vmem>>, vector<128x32xf32>
    %1 = arith.truncf %0 : vector<128x32xf32> to vector<128x32xbf16>
    %c0_1 = arith.constant 0 : index
    %c0_2 = arith.constant 0 : index
    %2 = vector.load %arg2[%c0_1, %c0_2] : memref<32x128xbf16, #tpu.memory_space<vmem>>, vector<32x128xbf16>
    %cst = arith.constant dense<0.000000e+00> : vector<128x128xf32>
    %3 = tpu.matmul %1, %2, %cst {dimension_numbers = #tpu.dot_dimension_numbers<[1], [0], [0], [1], [0, 0, 1, 1], [], []>} : vector<128x32xbf16>, vector<32x128xbf16>, vector<128x128xf32> -> vector<128x128xf32>
    %c0_3 = arith.constant 0 : index
    %c0_4 = arith.constant 0 : index
    %4 = vector.load %arg3[%c0_3, %c0_4] : memref<1x128xf32, #tpu.memory_space<vmem>>, vector<1x128xf32>
    %5 = vector.broadcast %4 : vector<1x128xf32> to vector<128x128xf32>
    %6 = arith.addf %3, %5 : vector<128x128xf32>
    %cst_5 = arith.constant 0.000000e+00 : f32
    %7 = vector.broadcast %cst_5 : f32 to vector<128x128xf32>
    %8 = arith.maximumf %6, %7 : vector<128x128xf32>
    %9 = arith.truncf %8 : vector<128x128xf32> to vector<128x128xbf16>
    %c0_6 = arith.constant 0 : index
    %c0_7 = arith.constant 0 : index
    %10 = vector.load %arg4[%c0_6, %c0_7] : memref<128x64xbf16, #tpu.memory_space<vmem>>, vector<128x64xbf16>
    %cst_8 = arith.constant dense<0.000000e+00> : vector<128x64xf32>
    %11 = tpu.matmul %9, %10, %cst_8 {dimension_numbers = #tpu.dot_dimension_numbers<[1], [0], [0], [1], [0, 0, 1, 1], [], []>} : vector<128x128xbf16>, vector<128x64xbf16>, vector<128x64xf32> -> vector<128x64xf32>
    %c0_9 = arith.constant 0 : index
    %c0_10 = arith.constant 0 : index
    %12 = vector.load %arg5[%c0_9, %c0_10] : memref<1x64xf32, #tpu.memory_space<vmem>>, vector<1x64xf32>
    %13 = vector.broadcast %12 : vector<1x64xf32> to vector<128x64xf32>
    %14 = arith.addf %11, %13 : vector<128x64xf32>
    %cst_11 = arith.constant 0.000000e+00 : f32
    %15 = vector.broadcast %cst_11 : f32 to vector<128x64xf32>
    %16 = arith.maximumf %14, %15 : vector<128x64xf32>
    %c0_12 = arith.constant 0 : index
    %c0_13 = arith.constant 0 : index
    %17 = vector.load %arg6[%c0_12, %c0_13] : memref<1x64xf32, #tpu.memory_space<vmem>>, vector<1x64xf32>
    %18 = vector.broadcast %17 : vector<1x64xf32> to vector<128x64xf32>
    %19 = arith.mulf %16, %18 : vector<128x64xf32>
    %cst_14 = arith.constant dense<0.000000e+00> : vector<128xf32>
    %20 = vector.multi_reduction <add>, %19, %cst_14 [1] : vector<128x64xf32> to vector<128xf32>
    %21 = vector.shape_cast %20 : vector<128xf32> to vector<128x1xf32>
    %c0_15 = arith.constant 0 : index
    %c0_16 = arith.constant 0 : index
    %22 = vector.load %arg7[%c0_15, %c0_16] : memref<1x1xf32, #tpu.memory_space<vmem>>, vector<1x1xf32>
    %23 = vector.broadcast %22 : vector<1x1xf32> to vector<128x1xf32>
    %24 = arith.addf %21, %23 : vector<128x1xf32>
    %25 = arith.negf %24 : vector<128x1xf32>
    %26 = math.exp %25 : vector<128x1xf32>
    %cst_17 = arith.constant 1.000000e+00 : f32
    %27 = vector.broadcast %cst_17 : f32 to vector<128x1xf32>
    %28 = arith.addf %27, %26 : vector<128x1xf32>
    %29 = arith.divf %27, %28 : vector<128x1xf32>
    %c0_18 = arith.constant 0 : index
    %c0_19 = arith.constant 0 : index
    %30 = vector.load %arg8[%c0_18, %c0_19] : memref<128x1xf32, #tpu.memory_space<vmem>>, vector<128x1xf32>
    tpu.vector_store %arg8[%c0_18, %c0_19], %29 {strides = array<i32>} : memref<128x1xf32, #tpu.memory_space<vmem>>, vector<128x1xf32>,
    return
  }
  func.func @transform_0(%arg0: i32) -> (i32, i32) {
    %c0_i32 = arith.constant 0 : i32
    %c0_i32_0 = arith.constant 0 : i32
    return %arg0, %c0_i32 : i32, i32
  }
  func.func @transform_1(%arg0: i32) -> (i32, i32) {
    %c0_i32 = arith.constant 0 : i32
    %c0_i32_0 = arith.constant 0 : i32
    %c0_i32_1 = arith.constant 0 : i32
    return %c0_i32, %c0_i32_0 : i32, i32
  }
  func.func @transform_2(%arg0: i32) -> (i32, i32) {
    %c0_i32 = arith.constant 0 : i32
    %c0_i32_0 = arith.constant 0 : i32
    %c0_i32_1 = arith.constant 0 : i32
    return %c0_i32, %c0_i32_0 : i32, i32
  }
  func.func @transform_3(%arg0: i32) -> (i32, i32) {
    %c0_i32 = arith.constant 0 : i32
    %c0_i32_0 = arith.constant 0 : i32
    %c0_i32_1 = arith.constant 0 : i32
    return %c0_i32, %c0_i32_0 : i32, i32
  }
  func.func @transform_4(%arg0: i32) -> (i32, i32) {
    %c0_i32 = arith.constant 0 : i32
    %c0_i32_0 = arith.constant 0 : i32
    %c0_i32_1 = arith.constant 0 : i32
    return %c0_i32, %c0_i32_0 : i32, i32
  }
  func.func @transform_5(%arg0: i32) -> (i32, i32) {
    %c0_i32 = arith.constant 0 : i32
    %c0_i32_0 = arith.constant 0 : i32
    %c0_i32_1 = arith.constant 0 : i32
    return %c0_i32, %c0_i32_0 : i32, i32
  }
  func.func @transform_6(%arg0: i32) -> (i32, i32) {
    %c0_i32 = arith.constant 0 : i32
    %c0_i32_0 = arith.constant 0 : i32
    %c0_i32_1 = arith.constant 0 : i32
    return %c0_i32, %c0_i32_0 : i32, i32
  }
  func.func @transform_7(%arg0: i32) -> (i32, i32) {
    %c0_i32 = arith.constant 0 : i32
    %c0_i32_0 = arith.constant 0 : i32
    return %arg0, %c0_i32 : i32, i32
  }
}

</mosaic_0001>

<bundles_post_ra>
// kernel: binary_classifier_forward.1
= control target key start
LH: loop header
LB: loop body
LE: loop exit
PB: predicated region body
PF: predicated region fallthrough
CT: control target
= control target key end

     0   :  { %vm76_vm0 = vcmask 261120   ;;  %vm429_vm1 = vcmask 523264   ;;  %vm597_vm2 = vcmask 7168   ;;  %s1096_s1 = inlined_call_operand.vmem [shape: bf16[32,128], index: 1, kind: input, shape index: {}]   ;;  %s1097_s0 = inlined_call_operand.vmem [shape: f32[128,32], index: 0, kind: input, shape index: {}]   ;;  %s1098_s3 = inlined_call_operand.vmem [shape: bf16[128,64], index: 3, kind: input, shape index: {}]   ;;  %s1099_s2 = inlined_call_operand.vmem [shape: f32[1,128], index: 2, kind: input, shape index: {}]   ;;  %s1100_s6 = inlined_call_operand.<no memory space> [shape: f32[1,1], index: 6, kind: input, shape index: {}]   ;;  %s1101_s4 = inlined_call_operand.vmem [shape: f32[1,64], index: 4, kind: input, shape index: {}]   ;;  %s1102_s5 = inlined_call_operand.vmem [shape: f32[1,64], index: 5, kind: input, shape index: {}]   ;;  %s1103_s7 = inlined_call_operand.vmem [shape: f32[128,1], index: 7, kind: output, shape index: {}]  }
   0x1   :  { %v750_v0 = vld [vmem:[%s1096_s1] sm:$0xff]   ;;  %v751_v1 = vld [vmem:[%s1096_s1 + $0x8] sm:$0xff]   ;;  %v31_v5 = vld [vmem:[%s1097_s0 + $0x10] sm:$0xff] }
   0x2   :  { %682 = vmatprep.subr.bf16.mxu0 %v750_v0  ;;  %v29_v2 = vld [vmem:[%s1097_s0] sm:$0xff]  ;;  %v30_v3 = vld [vmem:[%s1097_s0 + $0x8] sm:$0xff]  ;;  %v32_v6 = vld [vmem:[%s1097_s0 + $0x18] sm:$0xff] }
   0x3   :  { %683 = vmatpush3.bf16.msra.mxu0 %v750_v0  ;;  %v45_v4 = vpack.c.bf16 %v30_v3, %v29_v2  ;;  %v33_v7 = vld [vmem:[%s1097_s0 + $0x20] sm:$0xff]  ;;  %v34_v8 = vld [vmem:[%s1097_s0 + $0x28] sm:$0xff]  ;;  %v46_v9 = vpack.c.bf16 %v32_v6, %v31_v5  ;;  %v35_v12 = vld [vmem:[%s1097_s0 + $0x30] sm:$0xff] }
   0x4   :  { %684 = vmatprep.subr.bf16.mxu0 %v751_v1  ;;  %v47_v10 = vpack.c.bf16 %v34_v8, %v33_v7  ;;  %v752_v11 = vld [vmem:[%s1098_s3] sm:$0xff]   ;;  %v36_v13 = vld [vmem:[%s1097_s0 + $0x38] sm:$0xff]  ;;  %v753_v14 = vld [vmem:[%s1098_s3 + $0x8] sm:$0xff]  }
   0x5   :  { %686 = vmatprep.mubr.msk.bf16.mxu0 %vm76_vm0, %v45_v4  ;;  %v37_v15 = vld [vmem:[%s1097_s0 + $0x40] sm:$0xff]  ;;  %v38_v16 = vld [vmem:[%s1097_s0 + $0x48] sm:$0xff]  ;;  %734 = vmatprep.subr.bf16.mxu1 %v752_v11  ;;  %v754_v17 = vld [vmem:[%s1098_s3 + $0x10] sm:$0xff]   ;;  %v48_v18 = vpack.c.bf16 %v36_v13, %v35_v12 }
   0x6   :  { %742 = vmatpush3.bf16.msra.mxu1 %v752_v11  ;;  %v49_v19 = vpack.c.bf16 %v38_v16, %v37_v15  ;;  %v755_v20 = vld [vmem:[%s1098_s3 + $0x18] sm:$0xff]   ;;  %v39_v21 = vld [vmem:[%s1097_s0 + $0x50] sm:$0xff]  ;;  %v41_v23 = vld [vmem:[%s1097_s0 + $0x60] sm:$0xff] }
   0x7   :  { %685 = vmatpush3.bf16.msra.mxu0 %v751_v1  ;;  %735 = vmatprep.subr.bf16.mxu1 %v753_v14  ;;  %v40_v22 = vld [vmem:[%s1097_s0 + $0x58] sm:$0xff]  ;;  %v42_v24 = vld [vmem:[%s1097_s0 + $0x68] sm:$0xff]  ;;  %v756_v25 = vld [vmem:[%s1098_s3 + $0x20] sm:$0xff]  }
   0x8   :  { %702 = vmatprep.subr.bf16.mxu0 %v752_v11  ;;  %v50_v26 = vpack.c.bf16 %v40_v22, %v39_v21  ;;  %v51_v27 = vpack.c.bf16 %v42_v24, %v41_v23  ;;  %v757_v28 = vld [vmem:[%s1098_s3 + $0x28] sm:$0xff]   ;;  %v43_v29 = vld [vmem:[%s1097_s0 + $0x70] sm:$0xff]  ;;  %v44_v30 = vld [vmem:[%s1097_s0 + $0x78] sm:$0xff] }
   0x9   :  { %v52_v31 = vpack.c.bf16 %v44_v30, %v43_v29  ;;  %v758_v32 = vld [vmem:[%s1098_s3 + $0x30] sm:$0xff]   ;;  %v759_v33 = vld [vmem:[%s1098_s3 + $0x38] sm:$0xff]   ;;  %v618_v34 = vld [vmem:[%s1099_s2] ss:$0 sm:$0xff] }
   0xa   :  { %687 = vmatmul.mubr.msk.bf16.vlgmr.msra.gmra.mrb[0].mxu0 %vm76_vm0, %v46_v9  ;;  %743 = vmatpush3.bf16.msra.mxu1 %v753_v14 }
   0xb   :  { %690 = vmatprep.mubr.msk.bf16.mxu0 %vm76_vm0, %v47_v10  ;;  %703 = vmatpush3.bf16.msra.mxu0 %v752_v11 }
   0xc   :  { %704 = vmatprep.subr.bf16.mxu0 %v753_v14  ;;  %736 = vmatprep.subr.bf16.mxu1 %v754_v17 }
   0xe   :  { %744 = vmatpush3.bf16.msra.mxu1 %v754_v17 }
   0xf   :  { %705 = vmatpush3.bf16.msra.mxu0 %v753_v14  ;;  %737 = vmatprep.subr.bf16.mxu1 %v755_v20 }
  0x10   :  { %706 = vmatprep.subr.bf16.mxu0 %v754_v17 }
  0x12   :  { %691 = vmatmul.mubr.msk.bf16.gmra.mrb[4].mxu0 %vm76_vm0, %v48_v18  ;;  %745 = vmatpush3.bf16.msra.mxu1 %v755_v20 }
  0x13   :  { %694 = vmatprep.mubr.msk.bf16.mxu0 %vm76_vm0, %v49_v19  ;;  %707 = vmatpush3.bf16.msra.mxu0 %v754_v17 }
  0x14   :  { %708 = vmatprep.subr.bf16.mxu0 %v755_v20  ;;  %738 = vmatprep.subr.bf16.mxu1 %v756_v25 }
  0x16   :  { %746 = vmatpush3.bf16.msra.mxu1 %v756_v25 }
  0x17   :  { %709 = vmatpush3.bf16.msra.mxu0 %v755_v20  ;;  %739 = vmatprep.subr.bf16.mxu1 %v757_v28 }
  0x18   :  { %710 = vmatprep.subr.bf16.mxu0 %v756_v25 }
  0x1a   :  { %695 = vmatmul.mubr.msk.bf16.gmra.mrb[8].mxu0 %vm76_vm0, %v50_v26  ;;  %747 = vmatpush3.bf16.msra.mxu1 %v757_v28 }
  0x1b   :  { %698 = vmatprep.mubr.msk.bf16.mxu0 %vm76_vm0, %v51_v27  ;;  %711 = vmatpush3.bf16.msra.mxu0 %v756_v25  ;;  %v12_v27 = vstv %s1100_s6 }
  0x1c   :  { %712 = vmatprep.subr.bf16.mxu0 %v757_v28  ;;  %740 = vmatprep.subr.bf16.mxu1 %v758_v32  ;;  %13 = vst [vmem:[#allocation2] sm:$0x1] %v12_v27 }
  0x1e   :  { %748 = vmatpush3.bf16.msra.mxu1 %v758_v32 }
  0x1f   :  { %713 = vmatpush3.bf16.msra.mxu0 %v757_v28  ;;  %741 = vmatprep.subr.bf16.mxu1 %v759_v33  ;;  %v959_v28 = vld [vmem:[%s1101_s4] ss:$0 sm:$0xff] }
  0x20   :  { %714 = vmatprep.subr.bf16.mxu0 %v758_v32 }
  0x22   :  { %699 = vmatmul.mubr.msk.bf16.gmra.mrb[12].mxu0 %vm76_vm0, %v52_v31  ;;  %749 = vmatpush3.bf16.msra.mxu1 %v759_v33 }
  0x23   :  { %715 = vmatpush3.bf16.msra.mxu0 %v758_v32 }
  0x24   :  { %716 = vmatprep.subr.bf16.mxu0 %v759_v33 }
  0x27   :  { %717 = vmatpush3.bf16.msra.mxu0 %v759_v33 }
  0xdd   :  { %v688_v35 = vpop.f32.mrb[0].mxu0 }
  0xde   :  { %v144_v36 = vadd.f32 %v688_v35, %v618_v34  ;;  %v135_v37 = vpop.f32.mrb[1].mxu0 }
  0xdf   :  { %v136_v38 = vadd.f32 %v618_v34, %v135_v37  ;;  %v689_v39 = vpop.f32.mrb[2].mxu0 }
  0xe0   :  { %v147_v40 = vadd.f32 %v689_v39, %v618_v34  ;;  %v138_v41 = vpop.f32.mrb[3].mxu0  ;;  %v200_v43 = vmax.f32 %v144_v36, 0.0 }
  0xe1   :  { %v139_v42 = vadd.f32 %v618_v34, %v138_v41  ;;  %v198_v45 = vmax.f32 %v136_v38, 0.0 }
  0xe2   :  { %v201_v44 = vmax.f32 %v147_v40, 0.0 }
  0xe3   :  { %v199_v46 = vmax.f32 %v139_v42, 0.0 }
  0xe4   :  { %v215_v47 = vpack.c.bf16 %v201_v44, %v200_v43 }
  0xe5   :  { %v214_v48 = vpack.c.bf16 %v199_v46, %v198_v45  ;;  %v692_v49 = vpop.f32.mrb[4].mxu0 }
  0xe6   :  { %v160_v50 = vadd.f32 %v692_v49, %v618_v34  ;;  %v151_v51 = vpop.f32.mrb[5].mxu0 }
  0xe7   :  { %v152_v52 = vadd.f32 %v618_v34, %v151_v51  ;;  %v693_v53 = vpop.f32.mrb[6].mxu0  ;;  %718 = vmatprep.mubr.bf16.mxu0 %v214_v48 }
  0xe8   :  { %v163_v54 = vadd.f32 %v693_v53, %v618_v34  ;;  %v154_v55 = vpop.f32.mrb[7].mxu0  ;;  %719 = vmatmul.mubr.bf16.vlgmr.msra.gmra.mrb[16].mxu0 %v215_v47  ;;  %v204_v57 = vmax.f32 %v160_v50, 0.0 }
  0xe9   :  { %v155_v56 = vadd.f32 %v618_v34, %v154_v55  ;;  %v202_v59 = vmax.f32 %v152_v52, 0.0 }
  0xea   :  { %v205_v58 = vmax.f32 %v163_v54, 0.0 }
  0xeb   :  { %v203_v60 = vmax.f32 %v155_v56, 0.0 }
  0xec   :  { %v217_v61 = vpack.c.bf16 %v205_v58, %v204_v57 }
  0xed   :  { %v696_v62 = vpop.f32.mrb[8].mxu0  ;;  %v216_v63 = vpack.c.bf16 %v203_v60, %v202_v59 }
  0xee   :  { %v176_v0 = vadd.f32 %v696_v62, %v618_v34  ;;  %v167_v1 = vpop.f32.mrb[9].mxu0 }
  0xef   :  { %v168_v2 = vadd.f32 %v618_v34, %v167_v1  ;;  %v697_v3 = vpop.f32.mrb[10].mxu0  ;;  %722 = vmatprep.mubr.bf16.mxu1 %v216_v63 }
  0xf0   :  { %v179_v4 = vadd.f32 %v697_v3, %v618_v34  ;;  %v170_v5 = vpop.f32.mrb[11].mxu0  ;;  %723 = vmatmul.mubr.bf16.vlgmr.msra.gmra.mrb[0].mxu1 %v217_v61  ;;  %v208_v7 = vmax.f32 %v176_v0, 0.0 }
  0xf1   :  { %v171_v6 = vadd.f32 %v618_v34, %v170_v5  ;;  %v206_v9 = vmax.f32 %v168_v2, 0.0 }
  0xf2   :  { %v209_v8 = vmax.f32 %v179_v4, 0.0 }
  0xf3   :  { %v207_v10 = vmax.f32 %v171_v6, 0.0 }
  0xf4   :  { %v219_v11 = vpack.c.bf16 %v209_v8, %v208_v7 }
  0xf5   :  { %v218_v12 = vpack.c.bf16 %v207_v10, %v206_v9  ;;  %v700_v13 = vpop.f32.mrb[12].mxu0 }
  0xf6   :  { %v192_v14 = vadd.f32 %v700_v13, %v618_v34  ;;  %v183_v15 = vpop.f32.mrb[13].mxu0 }
  0xf7   :  { %v184_v16 = vadd.f32 %v618_v34, %v183_v15  ;;  %v701_v17 = vpop.f32.mrb[14].mxu0  ;;  %726 = vmatprep.mubr.bf16.mxu1 %v218_v12 }
  0xf8   :  { %v195_v18 = vadd.f32 %v701_v17, %v618_v34  ;;  %v186_v19 = vpop.f32.mrb[15].mxu0  ;;  %727 = vmatmul.mubr.bf16.gmra.mrb[4].mxu1 %v219_v11  ;;  %v212_v21 = vmax.f32 %v192_v14, 0.0 }
  0xf9   :  { %v187_v20 = vadd.f32 %v618_v34, %v186_v19  ;;  %v210_v23 = vmax.f32 %v184_v16, 0.0  ;;  %v966_v34 = vld [vmem:[%s1102_s5] ss:$0 sm:$0xff] }
  0xfa   :  { %v213_v22 = vmax.f32 %v195_v18, 0.0 }
  0xfb   :  { %v211_v24 = vmax.f32 %v187_v20, 0.0 }
  0xfc   :  { %v221_v25 = vpack.c.bf16 %v213_v22, %v212_v21 }
  0xfd   :  { %v220_v26 = vpack.c.bf16 %v211_v24, %v210_v23 }
  0xff   :  { %730 = vmatprep.mubr.bf16.mxu1 %v220_v26 }
 0x100   :  { %731 = vmatmul.mubr.bf16.gmra.mrb[8].mxu1 %v221_v25 }
 0x1bb   :  { %v720_v29 = vpop.f32.mrb[16].mxu0 }
 0x1bc   :  { %v336_v30 = vadd.f32 %v720_v29, %v959_v28  ;;  %v327_v31 = vpop.f32.mrb[17].mxu0 }
 0x1bd   :  { %v328_v32 = vadd.f32 %v959_v28, %v327_v31  ;;  %v721_v33 = vpop.f32.mrb[18].mxu0 }
 0x1be   :  { %v392_v35 = vmax.f32 %v336_v30, 0.0  ;;  %v339_v36 = vadd.f32 %v721_v33, %v959_v28  ;;  %v330_v37 = vpop.f32.mrb[19].mxu0 }
 0x1bf   :  { %v390_v38 = vmax.f32 %v328_v32, 0.0  ;;  %v331_v39 = vadd.f32 %v959_v28, %v330_v37 }
 0x1c0   :  { %v393_v40 = vmax.f32 %v339_v36, 0.0  ;;  %v415_v41 = vmul.f32 %v966_v34, %v392_v35 }
 0x1c1   :  { %v391_v42 = vmax.f32 %v331_v39, 0.0  ;;  %v413_v43 = vmul.f32 %v966_v34, %v390_v38 }
 0x1c2   :  { %v436_v44 = vsel %vm429_vm1, %v415_v41, 0.0  ;;  %v416_v45 = vmul.f32 %v966_v34, %v393_v40 }
 0x1c3   :  { %v724_v46 = vpop.f32.mrb[0].mxu1  ;;  %437 = vadd.xlane.f32.xlu1 %v436_v44  ;;  %v430_v47 = vsel %vm429_vm1, %v413_v43, 0.0  ;;  %v414_v48 = vmul.f32 %v966_v34, %v391_v42 }
 0x1c4   :  { %v352_v49 = vadd.f32 %v724_v46, %v959_v28  ;;  %v343_v50 = vpop.f32.mrb[1].mxu1  ;;  %431 = vadd.xlane.f32.xlu0 %v430_v47  ;;  %v439_v56 = vsel %vm429_vm1, %v416_v45, 0.0  ;;  %v1014_v47 = vld [vmem:[#allocation2] ss:$0 sm:$0xff] }
 0x1c5   :  { %v344_v51 = vadd.f32 %v959_v28, %v343_v50  ;;  %v725_v52 = vpop.f32.mrb[2].mxu1  ;;  %v433_v59 = vsel %vm429_vm1, %v414_v48, 0.0 }
 0x1c6   :  { %v396_v53 = vmax.f32 %v352_v49, 0.0  ;;  %v355_v54 = vadd.f32 %v725_v52, %v959_v28  ;;  %v346_v55 = vpop.f32.mrb[3].mxu1 }
 0x1c7   :  { %v394_v57 = vmax.f32 %v344_v51, 0.0  ;;  %v347_v58 = vadd.f32 %v959_v28, %v346_v55  ;;  %440 = vadd.xlane.f32.xlu1 %v439_v56 }
 0x1c8   :  { %v397_v60 = vmax.f32 %v355_v54, 0.0  ;;  %434 = vadd.xlane.f32.xlu0 %v433_v59  ;;  %v419_v61 = vmul.f32 %v966_v34, %v396_v53 }
 0x1c9   :  { %v395_v62 = vmax.f32 %v347_v58, 0.0  ;;  %v417_v2 = vmul.f32 %v966_v34, %v394_v57 }
 0x1ca   :  { %v448_v63 = vsel %vm429_vm1, %v419_v61, 0.0  ;;  %v420_v0 = vmul.f32 %v966_v34, %v397_v60 }
 0x1cb   :  { %v728_v1 = vpop.f32.mrb[4].mxu1  ;;  %v418_v6 = vmul.f32 %v966_v34, %v395_v62  ;;  %v442_v14 = vsel %vm429_vm1, %v417_v2, 0.0 }
 0x1cc   :  { %v368_v3 = vadd.f32 %v728_v1, %v959_v28  ;;  %v359_v4 = vpop.f32.mrb[5].mxu1  ;;  %449 = vadd.xlane.f32.xlu0 %v448_v63  ;;  %v451_v5 = vsel %vm429_vm1, %v420_v0, 0.0 }
 0x1cd   :  { %v360_v7 = vadd.f32 %v959_v28, %v359_v4  ;;  %v729_v8 = vpop.f32.mrb[6].mxu1  ;;  %452 = vadd.xlane.f32.xlu1 %v451_v5  ;;  %v445_v16 = vsel %vm429_vm1, %v418_v6, 0.0 }
 0x1ce   :  { %v400_v9 = vmax.f32 %v368_v3, 0.0  ;;  %v371_v10 = vadd.f32 %v729_v8, %v959_v28  ;;  %v362_v11 = vpop.f32.mrb[7].mxu1 }
 0x1cf   :  { %v398_v12 = vmax.f32 %v360_v7, 0.0  ;;  %v363_v13 = vadd.f32 %v959_v28, %v362_v11 }
 0x1d0   :  { %v401_v15 = vmax.f32 %v371_v10, 0.0  ;;  %443 = vadd.xlane.f32.xlu0 %v442_v14  ;;  %v423_v17 = vmul.f32 %v966_v34, %v400_v9 }
 0x1d1   :  { %v399_v18 = vmax.f32 %v363_v13, 0.0  ;;  %446 = vadd.xlane.f32.xlu1 %v445_v16  ;;  %v421_v22 = vmul.f32 %v966_v34, %v398_v12 }
 0x1d2   :  { %v460_v19 = vsel %vm429_vm1, %v423_v17, 0.0  ;;  %v424_v20 = vmul.f32 %v966_v34, %v401_v15 }
 0x1d3   :  { %v732_v21 = vpop.f32.mrb[8].mxu1  ;;  %v422_v26 = vmul.f32 %v966_v34, %v399_v18  ;;  %v454_v36 = vsel %vm429_vm1, %v421_v22, 0.0 }
 0x1d4   :  { %v384_v23 = vadd.f32 %v732_v21, %v959_v28  ;;  %v375_v24 = vpop.f32.mrb[9].mxu1  ;;  %461 = vadd.xlane.f32.xlu0 %v460_v19  ;;  %v463_v25 = vsel %vm429_vm1, %v424_v20, 0.0 }
 0x1d5   :  { %v376_v27 = vadd.f32 %v959_v28, %v375_v24  ;;  %v733_v29 = vpop.f32.mrb[10].mxu1  ;;  %464 = vadd.xlane.f32.xlu1 %v463_v25  ;;  %v457_v37 = vsel %vm429_vm1, %v422_v26, 0.0 }
 0x1d6   :  { %v387_v30 = vadd.f32 %v733_v29, %v959_v28  ;;  %v378_v31 = vpop.f32.mrb[11].mxu1  ;;  %v404_v32 = vmax.f32 %v384_v23, 0.0 }
 0x1d7   :  { %v402_v33 = vmax.f32 %v376_v27, 0.0  ;;  %v379_v35 = vadd.f32 %v959_v28, %v378_v31 }
 0x1d8   :  { %455 = vadd.xlane.f32.xlu0 %v454_v36  ;;  %v405_v38 = vmax.f32 %v387_v30, 0.0  ;;  %v427_v43 = vmul.f32 %v966_v34, %v404_v32 }
 0x1d9   :  { %v403_v39 = vmax.f32 %v379_v35, 0.0  ;;  %458 = vadd.xlane.f32.xlu1 %v457_v37  ;;  %v425_v40 = vmul.f32 %v966_v34, %v402_v33 }
 0x1da   :  { %v428_v28 = vmul.f32 %v966_v34, %v405_v38  ;;  %v472_v45 = vsel %vm429_vm1, %v427_v43, 0.0 }
 0x1db   :  { %v466_v41 = vsel %vm429_vm1, %v425_v40, 0.0  ;;  %v426_v42 = vmul.f32 %v966_v34, %v403_v39 }
 0x1dc   :  { %467 = vadd.xlane.f32.xlu0 %v466_v41  ;;  %v475_v46 = vsel %vm429_vm1, %v428_v28, 0.0 }
 0x1dd   :  { %v469_v44 = vsel %vm429_vm1, %v426_v42, 0.0 }
 0x1de   :  { %470 = vadd.xlane.f32.xlu1 %v469_v44 }
 0x1e0   :  { %473 = vadd.xlane.f32.xlu0 %v472_v45 }
 0x1e2   :  { %476 = vadd.xlane.f32.xlu1 %v475_v46 }
 0x250   :  { %v438_v48 = vpop.xlane.xlu1 %437 }
 0x251   :  { %v487_v49 = vadd.f32 %v1014_v47, %v438_v48  ;;  %v432_v50 = vpop.xlane.xlu0 %431 }
 0x252   :  { %v485_v51 = vadd.f32 %v1014_v47, %v432_v50 }
 0x253   :  { %v642_v52 = vmul.f32 -1.442695, %v487_v49 }
 0x254   :  { %v640_v53 = vmul.f32 -1.442695, %v485_v51  ;;  %v441_v54 = vpop.xlane.xlu1 %440 }
 0x255   :  { %760 = vpow2.f32 %v642_v52  ;;  %v488_v34 = vadd.f32 %v1014_v47, %v441_v54  ;;  %v435_v55 = vpop.xlane.xlu0 %434 }
 0x256   :  { %762 = vpow2.f32 %v640_v53  ;;  %v486_v56 = vadd.f32 %v1014_v47, %v435_v55 }
 0x257   :  { %v643_v57 = vmul.f32 -1.442695, %v488_v34 }
 0x258   :  { %v641_v58 = vmul.f32 -1.442695, %v486_v56 }
 0x259   :  { %764 = vpow2.f32 %v643_v57  ;;  %v450_v59 = vpop.xlane.xlu0 %449 }
 0x25a   :  { %766 = vpow2.f32 %v641_v58  ;;  %v491_v60 = vadd.f32 %v1014_v47, %v450_v59  ;;  %v453_v61 = vpop.xlane.xlu1 %452 }
 0x25b   :  { %v492_v62 = vadd.f32 %v1014_v47, %v453_v61 }
 0x25c   :  { %v646_v63 = vmul.f32 -1.442695, %v491_v60 }
 0x25d   :  { %v647_v0 = vmul.f32 -1.442695, %v492_v62  ;;  %v444_v1 = vpop.xlane.xlu0 %443 }
 0x25e   :  { %768 = vpow2.f32 %v646_v63  ;;  %v489_v2 = vadd.f32 %v1014_v47, %v444_v1  ;;  %v447_v3 = vpop.xlane.xlu1 %446 }
 0x25f   :  { %v761_v4 = vpop.eup %760  ;;  %770 = vpow2.f32 %v647_v0  ;;  %v490_v5 = vadd.f32 %v1014_v47, %v447_v3 }
 0x260   :  { %v763_v6 = vpop.eup %762  ;;  %v551_v7 = vadd.f32 1.0, %v761_v4  ;;  %v644_v8 = vmul.f32 -1.442695, %v489_v2 }
 0x261   :  { %v549_v9 = vadd.f32 1.0, %v763_v6  ;;  %v645_v10 = vmul.f32 -1.442695, %v490_v5  ;;  %v462_v11 = vpop.xlane.xlu0 %461 }
 0x262   :  { %772 = vrcp.f32 %v551_v7  ;;  %v495_v12 = vadd.f32 %v1014_v47, %v462_v11  ;;  %v465_v13 = vpop.xlane.xlu1 %464 }
 0x263   :  { %v765_v14 = vpop.eup %764  ;;  %774 = vrcp.f32 %v549_v9  ;;  %v496_v15 = vadd.f32 %v1014_v47, %v465_v13 }
 0x264   :  { %v767_v16 = vpop.eup %766  ;;  %v552_v17 = vadd.f32 1.0, %v765_v14  ;;  %776 = vpow2.f32 %v644_v8  ;;  %v650_v18 = vmul.f32 -1.442695, %v495_v12 }
 0x265   :  { %v550_v19 = vadd.f32 1.0, %v767_v16  ;;  %778 = vpow2.f32 %v645_v10  ;;  %v651_v20 = vmul.f32 -1.442695, %v496_v15  ;;  %v456_v21 = vpop.xlane.xlu0 %455 }
 0x266   :  { %780 = vrcp.f32 %v552_v17  ;;  %v493_v22 = vadd.f32 %v1014_v47, %v456_v21  ;;  %v459_v23 = vpop.xlane.xlu1 %458 }
 0x267   :  { %782 = vrcp.f32 %v550_v19  ;;  %v494_v24 = vadd.f32 %v1014_v47, %v459_v23 }
 0x268   :  { %v769_v25 = vpop.eup %768  ;;  %784 = vpow2.f32 %v650_v18  ;;  %v648_v26 = vmul.f32 -1.442695, %v493_v22 }
 0x269   :  { %v771_v27 = vpop.eup %770  ;;  %v555_v29 = vadd.f32 1.0, %v769_v25  ;;  %786 = vpow2.f32 %v651_v20  ;;  %v649_v30 = vmul.f32 -1.442695, %v494_v24  ;;  %v468_v31 = vpop.xlane.xlu0 %467 }
 0x26a   :  { %v556_v32 = vadd.f32 1.0, %v771_v27  ;;  %788 = vpow2.f32 %v648_v26  ;;  %v497_v33 = vadd.f32 %v1014_v47, %v468_v31 }
 0x26b   :  { %790 = vrcp.f32 %v555_v29  ;;  %v471_v35 = vpop.xlane.xlu1 %470 }
 0x26c   :  { %v773_v36 = vpop.eup %772  ;;  %792 = vrcp.f32 %v556_v32  ;;  %v652_v37 = vmul.f32 -1.442695, %v497_v33  ;;  %v498_v38 = vadd.f32 %v1014_v47, %v471_v35 }
 0x26d   :  { %v775_v39 = vpop.eup %774  ;;  %600 = vst.msk [vmem:[%s1103_s7 + $0x10] sm:$0xff] %vm597_vm2, %v773_v36  ;;  %794 = vpow2.f32 %v649_v30  ;;  %v474_v40 = vpop.xlane.xlu0 %473 }
 0x26e   :  { %v777_v41 = vpop.eup %776  ;;  %598 = vst.msk [vmem:[%s1103_s7] sm:$0xff] %vm597_vm2, %v775_v39  ;;  %796 = vpow2.f32 %v652_v37  ;;  %v653_v42 = vmul.f32 -1.442695, %v498_v38  ;;  %v499_v43 = vadd.f32 %v1014_v47, %v474_v40 }
 0x26f   :  { %v779_v44 = vpop.eup %778  ;;  %v553_v28 = vadd.f32 1.0, %v777_v41  ;;  %v477_v45 = vpop.xlane.xlu1 %476 }
 0x270   :  { %v781_v46 = vpop.eup %780  ;;  %v554_v48 = vadd.f32 1.0, %v779_v44  ;;  %798 = vpow2.f32 %v653_v42  ;;  %v654_v49 = vmul.f32 -1.442695, %v499_v43  ;;  %v500_v50 = vadd.f32 %v1014_v47, %v477_v45 }
 0x271   :  { %v783_v51 = vpop.eup %782  ;;  %601 = vst.msk [vmem:[%s1103_s7 + $0x18] sm:$0xff] %vm597_vm2, %v781_v46  ;;  %800 = vrcp.f32 %v553_v28 }
 0x272   :  { %v785_v52 = vpop.eup %784  ;;  %599 = vst.msk [vmem:[%s1103_s7 + $0x8] sm:$0xff] %vm597_vm2, %v783_v51  ;;  %802 = vrcp.f32 %v554_v48  ;;  %v655_v53 = vmul.f32 -1.442695, %v500_v50 }
 0x273   :  { %v787_v54 = vpop.eup %786  ;;  %v559_v34 = vadd.f32 1.0, %v785_v52  ;;  %804 = vpow2.f32 %v654_v49 }
 0x274   :  { %v789_v55 = vpop.eup %788  ;;  %v560_v47 = vadd.f32 1.0, %v787_v54  ;;  %806 = vpow2.f32 %v655_v53 }
 0x275   :  { %v791_v56 = vpop.eup %790  ;;  %808 = vrcp.f32 %v559_v34  ;;  %v557_v57 = vadd.f32 1.0, %v789_v55 }
 0x276   :  { %v793_v58 = vpop.eup %792  ;;  %604 = vst.msk [vmem:[%s1103_s7 + $0x30] sm:$0xff] %vm597_vm2, %v791_v56  ;;  %810 = vrcp.f32 %v560_v47 }
 0x277   :  { %v795_v59 = vpop.eup %794  ;;  %605 = vst.msk [vmem:[%s1103_s7 + $0x38] sm:$0xff] %vm597_vm2, %v793_v58  ;;  %812 = vrcp.f32 %v557_v57 }
 0x278   :  { %v797_v60 = vpop.eup %796  ;;  %v558_v61 = vadd.f32 1.0, %v795_v59 }
 0x279   :  { %v561_v62 = vadd.f32 1.0, %v797_v60 }
 0x27a   :  { %v799_v63 = vpop.eup %798  ;;  %814 = vrcp.f32 %v558_v61 }
 0x27b   :  { %v801_v0 = vpop.eup %800  ;;  %816 = vrcp.f32 %v561_v62  ;;  %v562_v1 = vadd.f32 1.0, %v799_v63 }
 0x27c   :  { %v803_v2 = vpop.eup %802  ;;  %602 = vst.msk [vmem:[%s1103_s7 + $0x20] sm:$0xff] %vm597_vm2, %v801_v0 }
 0x27d   :  { %v805_v3 = vpop.eup %804  ;;  %603 = vst.msk [vmem:[%s1103_s7 + $0x28] sm:$0xff] %vm597_vm2, %v803_v2  ;;  %818 = vrcp.f32 %v562_v1 }
 0x27e   :  { %v807_v4 = vpop.eup %806  ;;  %v563_v5 = vadd.f32 1.0, %v805_v3 }
 0x27f   :  { %v809_v6 = vpop.eup %808  ;;  %v564_v7 = vadd.f32 1.0, %v807_v4 }
 0x280   :  { %v811_v8 = vpop.eup %810  ;;  %608 = vst.msk [vmem:[%s1103_s7 + $0x50] sm:$0xff] %vm597_vm2, %v809_v6  ;;  %820 = vrcp.f32 %v563_v5 }
 0x281   :  { %v813_v9 = vpop.eup %812  ;;  %609 = vst.msk [vmem:[%s1103_s7 + $0x58] sm:$0xff] %vm597_vm2, %v811_v8  ;;  %822 = vrcp.f32 %v564_v7 }
 0x282   :  { %606 = vst.msk [vmem:[%s1103_s7 + $0x40] sm:$0xff] %vm597_vm2, %v813_v9 }
 0x284   :  { %v815_v10 = vpop.eup %814 }
 0x285   :  { %v817_v11 = vpop.eup %816  ;;  %607 = vst.msk [vmem:[%s1103_s7 + $0x48] sm:$0xff] %vm597_vm2, %v815_v10 }
 0x286   :  { %610 = vst.msk [vmem:[%s1103_s7 + $0x60] sm:$0xff] %vm597_vm2, %v817_v11 }
 0x287   :  { %v819_v12 = vpop.eup %818 }
 0x288   :  { %611 = vst.msk [vmem:[%s1103_s7 + $0x68] sm:$0xff] %vm597_vm2, %v819_v12 }
 0x28a   :  { %v821_v13 = vpop.eup %820 }
 0x28b   :  { %v823_v14 = vpop.eup %822  ;;  %612 = vst.msk [vmem:[%s1103_s7 + $0x70] sm:$0xff] %vm597_vm2, %v821_v13 }
 0x28c   :  { %613 = vst.msk [vmem:[%s1103_s7 + $0x78] sm:$0xff] %vm597_vm2, %v823_v14 }

</bundles_post_ra>
